<compile_context>
chip_gen: v5e
topology: v5e:2x2
jax: 0.10.0
libtpu: 0.0.40
codegen_flags: <defaults>
</compile_context>

<pallas_src>
import jax
import jax.numpy as jnp
from jax.experimental import pallas as pl
from jax.experimental.pallas import tpu as pltpu

_LANES = 128


def _round_up(n, m):
    return ((n + m - 1) // m) * m


def folded_linear_kernel(x_ref, w_ref, b_ref, o_ref):
    """One batch tile of y = x @ W^T + b via a folded de-interleave matmul.

    x_ref: VMEM [tile_rows, 128*p]  native-layout x, 128 samples per row
    w_ref: VMEM [128*p, 128]        Wfold[p*k + m, k] = W[m]   (grid-invariant)
    b_ref: SMEM [1]                 bias scalar
    o_ref: VMEM [tile_rows, 128]    lane-dense output block
    """
    y = jnp.dot(
        x_ref[...],
        w_ref[...],
        preferred_element_type=jnp.float32,
        precision=jax.lax.Precision.HIGHEST,   # keep f32-exact math on the MXU
    )
    o_ref[...] = (y + b_ref[0]).astype(o_ref.dtype)


def _pick_tile_rows(tile_rows, m_rows, bytes_per_row):
    """Clamp tile_rows to an (8,128)-friendly value that fits VMEM and, when
    possible, gives the grid at least 2 steps (megacore / pipeline overlap)."""
    # Keep the double-buffered in+out working set under ~40 MiB (v7x: 64 MiB VMEM).
    max_rows = max(8, (((40 << 20) // (2 * bytes_per_row)) // 8) * 8)
    tile_rows = max(8, min(tile_rows, max_rows))
    if tile_rows >= m_rows:
        if m_rows >= 16:
            tile_rows = _round_up(m_rows // 2, 8)   # ensures >= 2 grid steps
        else:
            tile_rows = m_rows                      # full-extent block (allowed)
    else:
        tile_rows = max(8, (tile_rows // 8) * 8)
    return tile_rows


def regression_forward(x, weight, bias, *, tile_rows=2048, force_kernel=False):
    """x: [N, p]; weight: [1, p] (PyTorch layout); bias: [1] -> y: [N, 1]."""
    N, p = x.shape
    itemsize = jnp.dtype(x.dtype).itemsize

    # Tiny problems: kernel launch + pipeline overhead loses to XLA's fused matvec.
    if not force_kernel and N * p * itemsize < (1 << 20):
        return (x @ weight.T + bias).astype(x.dtype)

    n_main = (N // _LANES) * _LANES
    if n_main == 0:
        return (x @ weight.T + bias).astype(x.dtype)

    m_rows = n_main // _LANES
    bytes_per_row = _LANES * (p + 1) * itemsize          # one tile-row of x + of y
    tile_rows = _pick_tile_rows(tile_rows, m_rows, bytes_per_row)
    grid = (pl.cdiv(m_rows, tile_rows),)

    # Free, contiguous reinterpretation: 128 samples (x p features) per row.
    x2 = x[:n_main].reshape(m_rows, _LANES * p)

    # Folded de-interleave weight: Wfold[p*k + m, j] = W[m] * (k == j).
    w = weight.reshape(p).astype(x.dtype)
    eye = jnp.eye(_LANES, dtype=x.dtype)
    w_fold = jnp.transpose(w[:, None, None] * eye[None, :, :], (1, 0, 2))
    w_fold = w_fold.reshape(_LANES * p, _LANES)

    b_sm = bias.reshape(1).astype(jnp.float32)           # SMEM scalar

    # Explicit VMEM budget (2 input bufs + 2 output bufs + resident weight).
    in_tile_bytes = tile_rows * _LANES * p * itemsize
    out_tile_bytes = tile_rows * _LANES * itemsize
    w_bytes = _LANES * p * _LANES * itemsize
    vmem_need = 2 * (in_tile_bytes + out_tile_bytes) + 2 * w_bytes + (4 << 20)
    vmem_limit = int(min(max(vmem_need, 32 << 20), 48 << 20))

    out = pl.pallas_call(
        folded_linear_kernel,
        out_shape=jax.ShapeDtypeStruct((m_rows, _LANES), x.dtype),
        grid=grid,
        in_specs=[
            pl.BlockSpec((tile_rows, _LANES * p), lambda i: (i, 0)),     # streamed x tile
            pl.BlockSpec((_LANES * p, _LANES), lambda i: (0, 0)),        # resident Wfold
            pl.BlockSpec(memory_space=pltpu.MemorySpace.SMEM),           # bias scalar
        ],
        out_specs=pl.BlockSpec((tile_rows, _LANES), lambda i: (i, 0)),   # lane-dense out
        compiler_params=pltpu.CompilerParams(
            dimension_semantics=("parallel",),                           # megacore on v7x
            vmem_limit_bytes=vmem_limit,
        ),
    )(x2, w_fold, b_sm)

    y_main = out.reshape(n_main, 1)                      # free contiguous reshape
    if n_main == N:
        return y_main

    # Ragged tail (< 128 samples): tiny XLA epilogue.
    y_tail = (x[n_main:] @ weight.T + bias).astype(x.dtype)
    return jnp.concatenate([y_main, y_tail], axis=0)


if __name__ == "__main__":
    p = 2
    N = 2048                                   # small, 128-aligned batch

    key = jax.random.PRNGKey(0)
    kx, kw, kb = jax.random.split(key, 3)

    # Deterministic nn.Linear-style init: U(-1/sqrt(p), 1/sqrt(p))
    bound = 1.0 / (p ** 0.5)
    weight = jax.random.uniform(kw, (1, p), jnp.float32, -bound, bound)   # [out=1, in=p]
    bias = jax.random.uniform(kb, (1,), jnp.float32, -bound, bound)       # [out=1]
    x = jax.random.normal(kx, (N, p), dtype=jnp.float32)

    # Force the Pallas path (small shapes would otherwise take the XLA fallback);
    # N=2048 -> 16 row-blocks of 128 samples -> a 2-step "parallel" grid.
    out = regression_forward(x, weight, bias, force_kernel=True)
    out = jax.block_until_ready(out)

    # Exact f32 reference (elementwise mul + sum, same math as torch.nn.Linear).
    ref = (x * weight.reshape(1, p)).sum(axis=1, keepdims=True) + bias
    assert out.shape == (N, 1)
    assert jnp.allclose(out, ref, atol=1e-5, rtol=1e-5)

    # Ragged batch: exercises the 128-aligned main path + tiny XLA tail.
    N2 = 2000
    xr = jax.random.normal(kb, (N2, p), dtype=jnp.float32)
    out2 = jax.block_until_ready(
        regression_forward(xr, weight, bias, force_kernel=True))
    ref2 = (xr * weight.reshape(1, p)).sum(axis=1, keepdims=True) + bias
    assert out2.shape == (N2, 1)
    assert jnp.allclose(out2, ref2, atol=1e-5, rtol=1e-5)

    print("KERNEL_OK")
</pallas_src>

<mosaic_0001>
module attributes {stable_mosaic.version = 11 : i64} {
  func.func @folded_linear_kernel(%arg0: i32, %arg1: memref<8x256xf32, #tpu.memory_space<vmem>>, %arg2: memref<256x128xf32, #tpu.memory_space<vmem>>, %arg3: memref<1xf32, #tpu.memory_space<smem>>, %arg4: memref<8x128xf32, #tpu.memory_space<vmem>>) attributes {dimension_semantics = [#tpu.dimension_semantics<parallel>], iteration_bounds = array<i64: 2>, scalar_prefetch = 0 : i64, scratch_operands = 0 : i64, tpu.core_type = #tpu.core_type<tc>, window_params = [{transform_indices = @transform_0, window_bounds = array<i64: 8, 256>}, {pipeline_mode = #tpu.pipeline_mode<synchronous>, transform_indices = @transform_1, window_bounds = array<i64: 256, 128>}, {transform_indices = @transform_2, window_bounds = array<i64: 1>}, {transform_indices = @transform_3, window_bounds = array<i64: 8, 128>}]} {
    %c0 = arith.constant 0 : index
    %c0_0 = arith.constant 0 : index
    %0 = vector.load %arg1[%c0, %c0_0] : memref<8x256xf32, #tpu.memory_space<vmem>>, vector<8x256xf32>
    %c0_1 = arith.constant 0 : index
    %c0_2 = arith.constant 0 : index
    %1 = vector.load %arg2[%c0_1, %c0_2] : memref<256x128xf32, #tpu.memory_space<vmem>>, vector<256x128xf32>
    %cst = arith.constant dense<0.000000e+00> : vector<8x128xf32>
    %2 = tpu.matmul %0, %1, %cst {dimension_numbers = #tpu.dot_dimension_numbers<[1], [0], [0], [1], [0, 0, 1, 1], [], []>, precision = #tpu.contract_precision<fp32>} : vector<8x256xf32>, vector<256x128xf32>, vector<8x128xf32> -> vector<8x128xf32>
    %c0_3 = arith.constant 0 : index
    %3 = memref.load %arg3[%c0_3] : memref<1xf32, #tpu.memory_space<smem>>
    %4 = vector.broadcast %3 : f32 to vector<8x128xf32>
    %5 = arith.addf %2, %4 : vector<8x128xf32>
    %c0_4 = arith.constant 0 : index
    %c0_5 = arith.constant 0 : index
    %6 = vector.load %arg4[%c0_4, %c0_5] : memref<8x128xf32, #tpu.memory_space<vmem>>, vector<8x128xf32>
    tpu.vector_store %arg4[%c0_4, %c0_5], %5 {strides = array<i32>} : memref<8x128xf32, #tpu.memory_space<vmem>>, vector<8x128xf32>,
    return
  }
  func.func @transform_0(%arg0: i32) -> (i32, i32) {
    %c0_i32 = arith.constant 0 : i32
    %c0_i32_0 = arith.constant 0 : i32
    return %arg0, %c0_i32 : i32, i32
  }
  func.func @transform_1(%arg0: i32) -> (i32, i32) {
    %c0_i32 = arith.constant 0 : i32
    %c0_i32_0 = arith.constant 0 : i32
    %c0_i32_1 = arith.constant 0 : i32
    return %c0_i32, %c0_i32_0 : i32, i32
  }
  func.func @transform_2(%arg0: i32) -> i32 {
    %c0_i32 = arith.constant 0 : i32
    %c0_i32_0 = arith.constant 0 : i32
    return %c0_i32 : i32
  }
  func.func @transform_3(%arg0: i32) -> (i32, i32) {
    %c0_i32 = arith.constant 0 : i32
    %c0_i32_0 = arith.constant 0 : i32
    return %arg0, %c0_i32 : i32, i32
  }
}

</mosaic_0001>

<bundles_post_ra>
// kernel: tpu_custom_call.1
= control target key start
LH: loop header
LB: loop body
LE: loop exit
PB: predicated region body
PF: predicated region fallthrough
CT: control target
= control target key end

     0   :  { %s1902_s0 = inlined_call_operand.hbm [shape: f32[16,256], index: 0, kind: input, shape index: {}]   ;;  %s1903_s1 = inlined_call_operand.hbm [shape: f32[256,128], index: 1, kind: input, shape index: {}]   ;;  %s1904_s2 = inlined_call_operand.<no memory space> [shape: f32[1], index: 2, kind: input, shape index: {}]   ;;  %s1905_s3 = inlined_call_operand.hbm [shape: f32[16,128], index: 3, kind: output, shape index: {}]  }
   0x1   :  { %8 = sst [smem:[#allocation2]] %s1904_s2 }
   0x2   :  { %9 = vsyncpa [#allocation4], 0 }
   0x3   :  { %11 = vsyncpa [#allocation4 + $0x1], 0 }
   0x4   :  { %12 = vsyncpa [#allocation7], 0 }
   0x5   :  { %13 = vsyncpa [#allocation5], 0 }
   0x6   :  { %15 = vsyncpa [#allocation5 + $0x1], 0  ;;  %s1255_s14 = smov 0   ;;  %s1257_s15 = smov 0  }
   0x7   :  { %s1259_s16 = smov 0   ;;  %s1261_s17 = smov 0  }
   0x8 LB: > { %s131_s19 = sshll.u32 %s1903_s1, 4  ;;  %s1279_s20 = sadd.s32 4294967295, %s1227_s17   ;;  %s1227_s17 = sphi %s1261_s17, %s1970_s17   ;;  %s1223_s16 = sphi %s1259_s16, %s1969_s16   ;;  %s1219_s15 = sphi %s1257_s15, %s1968_s15   ;;  %s1215_s14 = sphi %s1255_s14, %s1967_s14   ;;  %s132_s19 = int_to_ptr.hbm [resolvable:$true] %s131_s19 }
   0x9   : > { %p1023_p0 = scmp.ge.s32.totalorder %s1227_s17, 1  ;;  %p42_p1 = scmp.eq.s32.totalorder %s1279_s20, 0 }
   0xa   : > { %p120_p2 = scmp.lt.s32.totalorder %s1227_s17, 3  ;;  %s1229_s22 = smov [#allocation6]  }
   0xb   : > { %s133_s23 = sshll.u32 %s1229_s22, 4  ;;  %s1230_s24 = smov 128   ;;  %s134_s23 = int_to_ptr.vmem [resolvable:$true] %s133_s23 }
   0xc   : > { %p1284_p3 = pnand %p1023_p0, %p120_p2  ;;  %s1231_s25 = smov 8  }
   0xd   : > { %s1022_s26 = sadd.s32 4294967294, %s1227_s17   ;;  %s1295_s27 = sadd.s32 1, %s1227_s17  }
   0xe   : > { %p1046_p4 = pneg %p1284_p3  ;;  %s28_s28 = sadd.s32 1, %s1223_s16 }
   0xf   : > { %s25_s29 = ssub.s32 %s1227_s17, %s1295_s27  ;;  %p35_p7 = scmp.ne.s32.totalorder %s1223_s16, %s1219_s15 }
  0x10   : > { %p1047_p6 = pnand %p1046_p4, %p42_p1  ;;  %p26_p8 = scmp.eq.s32.totalorder %s25_s29, 0 }
  0x11   : > { %p36_p9 = scmp.eq.s32.totalorder %s1227_s17, 0  ;;  %p41_p10 = scmp.ne.s32.totalorder %s1219_s15, %s1215_s14 }
  0x12   : > { %1049 = dma.hbm_to_vmem [thread:$0]  (!%p1047_p6), %s132_s19, 4096, %s134_s23, [#allocation7], %s1230_s24, %s1230_s24, %s1231_s25  }
  0x13   : > { %p107_p11 = scmp.eq.s32.totalorder %s1279_s20, 1  ;;  %p1311_p12 = por %p42_p1, %p41_p10 }
  0x14   : > { %s1307_s30 = scalar_select %p26_p8, %s1223_s16, %s28_s28  }
  0x15   : > { %p1315_p13 = por %p107_p11, %p35_p7  ;;  %p113_p0 = scmp.eq.s32.totalorder %s1022_s26, 1 }
  0x16   : > { %p37_p2 = por %p36_p9, %p35_p7  ;;  %s150_s6 = sand.u32 1, %s1223_s16  }
  0x17   : > { %p1320_p4 = por %p113_p0, %p41_p10  ;;  %p1059_p6 = scmp.lt.s32.totalorder %s1227_s17, 2 }
  0x18   : > { %s1026_s8 = sshll.u32 %s150_s6, 4  ;;  %s1037_s9 = sshll.u32 %s1227_s17, 4 }
  0x19   : > { %s159_s12 = scalar_lea.hbm %s1902_s0, %s1037_s9  ;;  %s154_s2 = scalar_lea.vmem [#allocation3], %s1026_s8 }
  0x1a   : > { %s161_s13 = sshll.u32 %s159_s12, 4  ;;  %s163_s18 = sshll.u32 %s154_s2, 4  ;;  %s162_s13 = int_to_ptr.hbm [resolvable:$true] %s161_s13  ;;  %s164_s18 = int_to_ptr.vmem [resolvable:$true] %s163_s18 }
  0x1b   : > { %p1329_p8 = pnand %p1059_p6, %p37_p2  ;;  %s151_s22 = scalar_lea.sflag [#allocation4], %s150_s6 }
  0x1c   : > { %s1127_s23 = sshra.s32 %s162_s13, 4  ;;  %s1134_s28 = scalar_lea.hbm %s1902_s0, 32  ;;  %s1128_s23 = int_to_ptr.hbm [resolvable:$true] %s1127_s23 }
  0x1d   : > { %s1129_s24 = scalar_lea.hbm %s1128_s23, 16  ;;  %p1131_p9 = pneg %p1329_p8 }
  0x1e   : > { %p1130_p7 = scmp.ne.s32.totalorder %s1128_s23, %s1129_s24  ;;  %p1135_p0 = scmp.lt.s32.totalorder %s1128_s23, %s1902_s0 }
  0x1f   : > { %p1136_p2 = scmp.lt.s32.totalorder %s1134_s28, %s1129_s24 }
  0x20   : > { %p1132_p10 = pnand %p1131_p9, %p1130_p7 }
  0x21   : > { %p1137_p6 = por %p1136_p2, %p1135_p0 }
  0x22   : > { %p1133_p11 = pneg %p1132_p10 }
  0x24   : > { %p1138_p5 = pnand %p1137_p6, %p1133_p11 }
  0x26   : > { %1141 = shalt.err (!%p1138_p5)
}
  0x27   : > { %1053 = dma.hbm_to_vmem [thread:$0]  (!%p1329_p8), %s162_s13, 256, %s164_s18, %s151_s22  }
  0x28   : > { %172 = sbr.rel (%p1284_p3) target bundleno = 295 (0x127), region = 32 }
  0x2d   : > { %s1346_s6 = sand.u32 1, %s1219_s15  }
  0x2e   : > { %s1030_s9 = sshll.u32 %s1346_s6, 4  ;;  %s175_s10 = scalar_lea.sflag [#allocation4], %s1346_s6 }
  0x2f   : > { %s1350_s11 = scalar_lea.vmem [#allocation3], %s1030_s9 }
  0x30   : > { %1202 = dma.done.wait (%p1311_p12), %s175_s10, 256  }
  0x31   : > { %1204 = vsyncadd (%p1311_p12), %s175_s10, 4294967040 }
  0x32   : > { %1206 = dma.done.wait (%p42_p1), [#allocation7], 4096  }
  0x33   : > { %1208 = vsyncadd (%p42_p1), [#allocation7], 4294963200  ;;  %v224_v0 = vld [vmem:[#allocation6 + $0x78] sm:$0xff]  ;;  %v223_v1 = vld [vmem:[#allocation6 + $0x70] sm:$0xff]  ;;  %s241_s21 = sld [smem:[#allocation2]]  ;;  %s1032_s4 = sshll.u32 %s1346_s6, 3 }
  0x34   : > { %v222_v2 = vld [vmem:[#allocation6 + $0x68] sm:$0xff]  ;;  %v1360_v3 = vand.u32 4294901760, %v224_v0  ;;  %v1362_v4 = vand.u32 4294901760, %v223_v1  ;;  %v221_v6 = vld [vmem:[#allocation6 + $0x60] sm:$0xff]  ;;  %v220_v7 = vld [vmem:[#allocation6 + $0x58] sm:$0xff]  ;;  %s1034_s12 = sshll.u32 %s1279_s20, 3 }
  0x35   : > { %v1364_v5 = vand.u32 4294901760, %v222_v2  ;;  %v219_v8 = vld [vmem:[#allocation6 + $0x50] sm:$0xff]  ;;  %v1366_v9 = vand.u32 4294901760, %v221_v6  ;;  %v1368_v10 = vand.u32 4294901760, %v220_v7  ;;  %v218_v12 = vld [vmem:[#allocation6 + $0x48] sm:$0xff]  ;;  %v217_v13 = vld [vmem:[#allocation6 + $0x40] sm:$0xff]  ;;  %s937_s18 = scalar_lea.hbm %s1905_s3, %s1034_s12 }
  0x36   : > { %v1370_v11 = vand.u32 4294901760, %v219_v8  ;;  %244 = vmatpush.msra.mxu0 %v1360_v3  ;;  %v1374_v14 = vsub.f32 %v224_v0, %v1360_v3  ;;  %v1377_v15 = vsub.f32 %v223_v1, %v1362_v4  ;;  %440 = vmatpush.msra.mxu3 %v1360_v3  ;;  %v1383_v17 = vand.u32 4294901760, %v218_v12  ;;  %v216_v21 = vld [vmem:[#allocation6 + $0x38] sm:$0xff]  ;;  %v215_v26 = vld [vmem:[#allocation6 + $0x30] sm:$0xff]  ;;  %v214_v36 = vld [vmem:[#allocation6 + $0x28] sm:$0xff]  ;;  %s206_s19 = scalar_lea.vmem [#allocation8], %s1032_s4 }
  0x37   : > { %v1381_v16 = vsub.f32 %v222_v2, %v1364_v5  ;;  %v1386_v18 = vsub.f32 %v221_v6, %v1366_v9  ;;  %v1389_v19 = vsub.f32 %v220_v7, %v1368_v10  ;;  %v1399_v25 = vand.u32 4294901760, %v217_v13  ;;  %v213_v42 = vld [vmem:[#allocation6 + $0x20] sm:$0xff]  ;;  %v212_v47 = vld [vmem:[#allocation6 + $0x18] sm:$0xff]  ;;  %v211_v54 = vld [vmem:[#allocation6 + $0x10] sm:$0xff]  ;;  %s939_s22 = sshll.u32 %s206_s19, 4  ;;  %s941_s23 = sshll.u32 %s937_s18, 4  ;;  %s940_s22 = int_to_ptr.vmem [resolvable:$true] %s939_s22  ;;  %s942_s23 = int_to_ptr.hbm [resolvable:$true] %s941_s23 }
  0x38   : > { %v1392_v20 = vsub.f32 %v219_v8, %v1370_v11  ;;  %246 = vmatpush.msra.mxu0 %v1362_v4  ;;  %387 = vmatpush.msra.mxu2 %v1374_v14  ;;  %v286_v22 = vand.u32 4294901760, %v1374_v14  ;;  %v1921_v23 = vand.u32 4294901760, %v1377_v15  ;;  %v1405_v29 = vsub.f32 %v218_v12, %v1383_v17  ;;  %v240_v59 = vld [vmem:[#allocation6 + $0xf8] sm:$0xff]  ;;  %v210_v61 = vld [vmem:[#allocation6 + $0x8] sm:$0xff]  ;;  %v209_v2 = vld [vmem:[#allocation6] sm:$0xff]  ;;  %s927_s24 = scalar_lea.sflag [#allocation5], %s1346_s6 }
  0x39   : > { %v1919_v24 = vand.u32 4294901760, %v1381_v16  ;;  %442 = vmatpush.msra.mxu3 %v1362_v4  ;;  %v1918_v27 = vand.u32 4294901760, %v1386_v18  ;;  %v1915_v28 = vand.u32 4294901760, %v1389_v19  ;;  %v1418_v33 = vand.u32 4294901760, %v216_v21  ;;  %v239_v6 = vld [vmem:[#allocation6 + $0xf0] sm:$0xff]  ;;  %s1171_s20 = sshra.s32 %s942_s23, 4  ;;  %s1172_s20 = int_to_ptr.hbm [resolvable:$true] %s1171_s20 }
  0x3a   : > { %248 = vmatpush.msra.mxu0 %v1364_v5  ;;  %390 = vmatpush.msra.mxu2 %v1377_v15  ;;  %v287_v30 = vsub.f32 %v1374_v14, %v286_v22  ;;  %v293_v31 = vsub.f32 %v1377_v15, %v1921_v23  ;;  %v1421_v34 = vand.u32 4294901760, %v215_v26  ;;  %v1913_v35 = vand.u32 4294901760, %v1392_v20  ;;  %s1173_s25 = scalar_lea.hbm %s1172_s20, 8  ;;  %s1177_s29 = scalar_lea.hbm %s1905_s3, 16 }
  0x3b   : > { %v299_v32 = vsub.f32 %v1381_v16, %v1919_v24  ;;  %444 = vmatpush.msra.mxu3 %v1364_v5  ;;  %v305_v39 = vsub.f32 %v1386_v18, %v1918_v27  ;;  %v1430_v40 = vsub.f32 %v217_v13, %v1399_v25  ;;  %v311_v41 = vsub.f32 %v1389_v19, %v1915_v28  ;;  %p1174_p1 = scmp.ne.s32.totalorder %s1172_s20, %s1173_s25  ;;  %p1178_p12 = scmp.lt.s32.totalorder %s1172_s20, %s1905_s3 }
  0x3c   : > { %250 = vmatpush.msra.mxu0 %v1366_v9  ;;  %v288_v37 = vand.u32 4294901760, %v287_v30  ;;  %393 = vmatpush.msra.mxu2 %v1381_v16  ;;  %v294_v38 = vand.u32 4294901760, %v293_v31  ;;  %v1437_v44 = vand.u32 4294901760, %v214_v36  ;;  %v1912_v45 = vand.u32 4294901760, %v1405_v29  ;;  %p1179_p8 = scmp.lt.s32.totalorder %s1177_s29, %s1173_s25 }
  0x3d   : > { %446 = vmatpush.msra.mxu3 %v1366_v9  ;;  %v300_v43 = vand.u32 4294901760, %v299_v32  ;;  %v1441_v46 = vsub.f32 %v216_v21, %v1418_v33  ;;  %v317_v48 = vsub.f32 %v1392_v20, %v1913_v35  ;;  %v306_v49 = vand.u32 4294901760, %v305_v39  ;;  %v238_v32 = vld [vmem:[#allocation6 + $0xe8] sm:$0xff]  ;;  %p1175_p3 = pnand %p1174_p1, %p1315_p13 }
  0x3e   : > { %252 = vmatpush.msra.mxu0 %v1368_v10  ;;  %289 = vmatpush.msra.mxu1 %v288_v37  ;;  %v1449_v50 = vand.u32 4294901760, %v213_v42  ;;  %v1911_v51 = vand.u32 4294901760, %v1430_v40  ;;  %v1453_v52 = vsub.f32 %v215_v26, %v1421_v34  ;;  %v1457_v53 = vand.u32 4294901760, %v212_v47  ;;  %p1180_p7 = por %p1179_p8, %p1178_p12 }
  0x3f   : > { %396 = vmatpush.msra.mxu2 %v1386_v18  ;;  %448 = vmatpush.msra.mxu3 %v1368_v10  ;;  %v312_v55 = vand.u32 4294901760, %v311_v41  ;;  %v323_v56 = vsub.f32 %v1405_v29, %v1912_v45  ;;  %v1910_v57 = vand.u32 4294901760, %v1441_v46  ;;  %v1465_v58 = vsub.f32 %v214_v36, %v1437_v44  ;;  %v233_v45 = vld [vmem:[#allocation6 + $0xc0] sm:$0xff]  ;;  %p1176_p5 = pneg %p1175_p3 }
  0x40   : > { %254 = vmatpush.msra.mxu0 %v1370_v11  ;;  %295 = vmatpush.msra.mxu1 %v294_v38  ;;  %v318_v60 = vand.u32 4294901760, %v317_v48  ;;  %v329_v62 = vsub.f32 %v1430_v40, %v1911_v51  ;;  %v1473_v63 = vand.u32 4294901760, %v211_v54  ;;  %v1909_v0 = vand.u32 4294901760, %v1453_v52 }
  0x41   : > { %399 = vmatpush.msra.mxu2 %v1389_v19  ;;  %450 = vmatpush.msra.mxu3 %v1370_v11  ;;  %v1477_v1 = vsub.f32 %v213_v42, %v1449_v50  ;;  %v1482_v7 = vsub.f32 %v212_v47, %v1457_v53  ;;  %v1484_v8 = vand.u32 4294901760, %v240_v59  ;;  %v324_v12 = vand.u32 4294901760, %v323_v56  ;;  %p1181_p9 = pnand %p1180_p7, %p1176_p5 }
  0x42   : > { %256 = vmatpush.msra.mxu0 %v1383_v17  ;;  %301 = vmatpush.msra.mxu1 %v300_v43  ;;  %v335_v13 = vsub.f32 %v1441_v46, %v1910_v57  ;;  %v1490_v21 = vand.u32 4294901760, %v210_v61  ;;  %v1907_v26 = vand.u32 4294901760, %v1465_v58  ;;  %v1495_v30 = vand.u32 4294901760, %v209_v2  ;;  %v237_v43 = vld [vmem:[#allocation6 + $0xe0] sm:$0xff]  ;;  %v234_v57 = vld [vmem:[#allocation6 + $0xc8] sm:$0xff] }
  0x43   : > { %402 = vmatpush.msra.mxu2 %v1392_v20  ;;  %452 = vmatpush.msra.mxu3 %v1383_v17  ;;  %v1497_v31 = vand.u32 4294901760, %v239_v6  ;;  %v330_v36 = vand.u32 4294901760, %v329_v62  ;;  %v341_v37 = vsub.f32 %v1453_v52, %v1909_v0  ;;  %v1906_v38 = vand.u32 4294901760, %v1477_v1 }
  0x44   : > { %258 = vmatpush.msra.mxu0 %v1399_v25  ;;  %307 = vmatpush.msra.mxu1 %v306_v49  ;;  %1929 = vst [vmem:[#allocation12_spill] sm:$0xff] %v1495_v30  ;;  %v1505_v39 = vsub.f32 %v211_v54, %v1473_v63  ;;  %v1908_v41 = vand.u32 4294901760, %v1482_v7  ;;  %v1511_v42 = vsub.f32 %v240_v59, %v1484_v8  ;;  %v336_v47 = vand.u32 4294901760, %v335_v13  ;;  %v236_v59 = vld [vmem:[#allocation6 + $0xd8] sm:$0xff]  ;;  %v235_v13 = vld [vmem:[#allocation6 + $0xd0] sm:$0xff] }
  0x45   : > { %405 = vmatpush.msra.mxu2 %v1405_v29  ;;  %454 = vmatpush.msra.mxu3 %v1399_v25  ;;  %v347_v48 = vsub.f32 %v1465_v58, %v1907_v26  ;;  %v1518_v49 = vsub.f32 %v210_v61, %v1490_v21  ;;  %v1520_v54 = vand.u32 4294901760, %v238_v32  ;;  %v1528_v56 = vsub.f32 %v239_v6, %v1497_v31 }
  0x46   : > { %260 = vmatpush.msra.mxu0 %v1418_v33  ;;  %313 = vmatpush.msra.mxu1 %v312_v55  ;;  %v1525_v55 = vsub.f32 %v209_v2, %v1495_v30  ;;  %v353_v61 = vsub.f32 %v1477_v1, %v1906_v38  ;;  %v1914_v62 = vand.u32 4294901760, %v1505_v39  ;;  %v359_v2 = vsub.f32 %v1482_v7, %v1908_v41 }
  0x47   : > { %408 = vmatpush.msra.mxu2 %v1430_v40  ;;  %456 = vmatpush.msra.mxu3 %v1418_v33  ;;  %v1916_v6 = vand.u32 4294901760, %v1511_v42  ;;  %v1546_v38 = vsub.f32 %v238_v32, %v1520_v54  ;;  %v1548_v26 = vand.u32 4294901760, %v236_v59  ;;  %v1920_v0 = vand.u32 4294901760, %v1528_v56 }
  0x48   : > { %262 = vmatpush.msra.mxu0 %v1421_v34  ;;  %319 = vmatpush.msra.mxu1 %v318_v60  ;;  %v342_v60 = vand.u32 4294901760, %v341_v37  ;;  %v1917_v37 = vand.u32 4294901760, %v1518_v49  ;;  %v1922_v41 = vand.u32 4294901760, %v1525_v55  ;;  %v365_v32 = vsub.f32 %v1505_v39, %v1914_v62 }
  0x49   : > { %411 = vmatpush.msra.mxu2 %v1441_v46  ;;  %458 = vmatpush.msra.mxu3 %v1421_v34  ;;  %v1561_v51 = vand.u32 4294901760, %v235_v13  ;;  %v360_v35 = vand.u32 4294901760, %v359_v2  ;;  %v1574_v62 = vsub.f32 %v236_v59, %v1548_v26  ;;  %v1576_v28 = vand.u32 4294901760, %v234_v57  ;;  %v232_v2 = vld [vmem:[#allocation6 + $0xb8] sm:$0xff] }
  0x4a   : > { %264 = vmatpush.msra.mxu0 %v1437_v44  ;;  %325 = vmatpush.msra.mxu1 %v324_v12  ;;  %v1535_v12 = vand.u32 4294901760, %v237_v43  ;;  %v377_v59 = vsub.f32 %v1525_v55, %v1922_v41  ;;  %v1596_v23 = vand.u32 4294901760, %v232_v2  ;;  %v1931_v14 = vand.u32 4294901760, %v1377_v15 }
  0x4b   : > { %414 = vmatpush.msra.mxu2 %v1453_v52  ;;  %460 = vmatpush.msra.mxu3 %v1437_v44  ;;  %v1591_v24 = vsub.f32 %v235_v13, %v1561_v51  ;;  %v1604_v27 = vsub.f32 %v234_v57, %v1576_v28  ;;  %v1933_v15 = vand.u32 4294901760, %v1381_v16  ;;  %v1935_v16 = vand.u32 4294901760, %v1386_v18 }
  0x4c   : > { %266 = vmatpush.msra.mxu0 %v1449_v50  ;;  %331 = vmatpush.msra.mxu1 %v330_v36  ;;  %v348_v36 = vand.u32 4294901760, %v347_v48  ;;  %v1559_v48 = vsub.f32 %v237_v43, %v1535_v12  ;;  %v371_v43 = vsub.f32 %v1518_v49, %v1917_v37  ;;  %v366_v37 = vand.u32 4294901760, %v365_v32 }
  0x4d   : > { %417 = vmatpush.msra.mxu2 %v1465_v58  ;;  %462 = vmatpush.msra.mxu3 %v1449_v50  ;;  %v1930_v32 = vand.u32 4294901760, %v1546_v38  ;;  %v1937_v18 = vand.u32 4294901760, %v1389_v19  ;;  %v1939_v19 = vand.u32 4294901760, %v1392_v20  ;;  %v1941_v20 = vand.u32 4294901760, %v1405_v29 }
  0x4e   : > { %268 = vmatpush.msra.mxu0 %v1457_v53  ;;  %337 = vmatpush.msra.mxu1 %v336_v47  ;;  %v354_v47 = vand.u32 4294901760, %v353_v61  ;;  %v231_v61 = vld [vmem:[#allocation6 + $0xb0] sm:$0xff]  ;;  %v1943_v29 = vand.u32 4294901760, %v1430_v40  ;;  %v1945_v40 = vand.u32 4294901760, %v1441_v46  ;;  %v1947_v46 = vand.u32 4294901760, %v1453_v52 }
  0x4f   : > { %420 = vmatpush.msra.mxu2 %v1477_v1  ;;  %464 = vmatpush.msra.mxu3 %v1457_v53  ;;  %v640_v41 = vsub.f32 %v1546_v38, %v1930_v32  ;;  %v1932_v32 = vand.u32 4294901760, %v1559_v48 }
  0x50   : > { %270 = vmatpush.msra.mxu0 %v1473_v63  ;;  %343 = vmatpush.msra.mxu1 %v342_v60  ;;  %v628_v60 = vsub.f32 %v1511_v42, %v1916_v6  ;;  %v1583_v6 = vand.u32 4294901760, %v233_v45 }
  0x51   : > { %423 = vmatpush.msra.mxu2 %v1482_v7  ;;  %466 = vmatpush.msra.mxu3 %v1473_v63  ;;  %v646_v13 = vsub.f32 %v1559_v48, %v1932_v32 }
  0x52   : > { %272 = vmatpush.msra.mxu0 %v1490_v21  ;;  %349 = vmatpush.msra.mxu1 %v348_v36  ;;  %v634_v36 = vsub.f32 %v1528_v56, %v1920_v0  ;;  %v629_v0 = vand.u32 4294901760, %v628_v60  ;;  %v230_v60 = vld [vmem:[#allocation6 + $0xa8] sm:$0xff] }
  0x53   : > { %426 = vmatpush.msra.mxu2 %v1505_v39  ;;  %468 = vmatpush.msra.mxu3 %v1490_v21  ;;  %v1629_v57 = vand.u32 4294901760, %v230_v60 }
  0x54   : > { %274 = vmatpush.msra.mxu0 %v1495_v30  ;;  %355 = vmatpush.msra.mxu1 %v354_v47  ;;  %v372_v47 = vand.u32 4294901760, %v371_v43  ;;  %v378_v43 = vand.u32 4294901760, %v377_v59  ;;  %v1934_v59 = vand.u32 4294901760, %v1574_v62 }
  0x55   : > { %429 = vmatpush.msra.mxu2 %v1518_v49  ;;  %470 = vmatpush.msra.mxu3 %v1495_v30  ;;  %v1617_v30 = vand.u32 4294901760, %v231_v61 }
  0x56   : > { %481 = vmatpush.msrb.mxu0 %v286_v22  ;;  %361 = vmatpush.msra.mxu1 %v360_v35  ;;  %v635_v22 = vand.u32 4294901760, %v634_v36  ;;  %v1610_v35 = vsub.f32 %v233_v45, %v1583_v6  ;;  %v1622_v45 = vsub.f32 %v232_v2, %v1596_v23  ;;  %v229_v36 = vld [vmem:[#allocation6 + $0xa0] sm:$0xff]  ;;  %v228_v2 = vld [vmem:[#allocation6 + $0x98] sm:$0xff] }
  0x57   : > { %432 = vmatpush.msra.mxu2 %v1525_v55  ;;  %630 = vmatpush.msrb.mxu3 %v629_v0  ;;  %v1641_v32 = vand.u32 4294901760, %v229_v36  ;;  %v1655_v0 = vand.u32 4294901760, %v228_v2 }
  0x58   : > { %485 = vmatpush.msrb.mxu0 %v1931_v14  ;;  %367 = vmatpush.msra.mxu1 %v366_v37  ;;  %v641_v37 = vand.u32 4294901760, %v640_v41  ;;  %v652_v14 = vsub.f32 %v1574_v62, %v1934_v59  ;;  %v647_v41 = vand.u32 4294901760, %v646_v13  ;;  %v1639_v59 = vsub.f32 %v231_v61, %v1617_v30 }
  0x59   : > { %585 = vmatpush.msrb.mxu2 %v1484_v8  ;;  %636 = vmatpush.msrb.mxu3 %v635_v22  ;;  %v1653_v61 = vsub.f32 %v230_v60, %v1629_v57  ;;  %v1666_v60 = vsub.f32 %v229_v36, %v1641_v32 }
  0x5a   : > { %489 = vmatpush.msrb.mxu0 %v1933_v15  ;;  %373 = vmatpush.msra.mxu1 %v372_v47  ;;  %v1936_v47 = vand.u32 4294901760, %v1591_v24  ;;  %v653_v13 = vand.u32 4294901760, %v652_v14 }
  0x5b   : > { %587 = vmatpush.msrb.mxu2 %v1497_v31  ;;  %642 = vmatpush.msrb.mxu3 %v641_v37  ;;  %v227_v37 = vld [vmem:[#allocation6 + $0x90] sm:$0xff] }
  0x5c   : > { %493 = vmatpush.msrb.mxu0 %v1935_v16  ;;  %379 = vmatpush.msra.mxu1 %v378_v43  ;;  %v658_v15 = vsub.f32 %v1591_v24, %v1936_v47  ;;  %v207_v43 = vld [vmem:[%s1350_s11] sm:$0xff]  ;;  %v1938_v16 = vand.u32 4294901760, %v1604_v27  ;;  %v1678_v36 = vand.u32 4294901760, %v227_v37 }
  0x5d   : > { %589 = vmatpush.msrb.mxu2 %v1520_v54  ;;  %648 = vmatpush.msrb.mxu3 %v647_v41  ;;  %v1668_v22 = vand.u32 4294901760, %v207_v43 }
  0x5e   : > { %497 = vmatpush.msrb.mxu0 %v1937_v18  ;;  %548 = vmatpush.msrb.mxu1 %v1360_v3  ;;  %v664_v47 = vsub.f32 %v1604_v27, %v1938_v16  ;;  %v1940_v3 = vand.u32 4294901760, %v1610_v35  ;;  %v659_v14 = vand.u32 4294901760, %v658_v15  ;;  %v1681_v16 = vsub.f32 %v228_v2, %v1655_v0 }
  0x5f   : > { %591 = vmatpush.msrb.mxu2 %v1535_v12  ;;  %654 = vmatpush.msrb.mxu3 %v653_v13  ;;  %v1944_v13 = vand.u32 4294901760, %v1639_v59  ;;  %v1692_v15 = vsub.f32 %v207_v43, %v1668_v22  ;;  %v1705_v43 = vsub.f32 %v227_v37, %v1678_v36 }
  0x60   : > { %501 = vmatpush.msrb.mxu0 %v1939_v19  ;;  %550 = vmatpush.msrb.mxu1 %v1362_v4  ;;  %v670_v18 = vsub.f32 %v1610_v35, %v1940_v3  ;;  %v1942_v4 = vand.u32 4294901760, %v1622_v45  ;;  %v226_v3 = vld [vmem:[#allocation6 + $0x88] sm:$0xff]  ;;  %v665_v41 = vand.u32 4294901760, %v664_v47 }
  0x61   : > { %593 = vmatpush.msrb.mxu2 %v1548_v26  ;;  %660 = vmatpush.msrb.mxu3 %v659_v14  ;;  %v682_v47 = vsub.f32 %v1639_v59, %v1944_v13  ;;  %v1694_v2 = vand.u32 4294901760, %v226_v3 }
  0x62   : > { %505 = vmatpush.msrb.mxu0 %v1941_v20  ;;  %552 = vmatpush.msrb.mxu1 %v1364_v5  ;;  %v676_v19 = vsub.f32 %v1622_v45, %v1942_v4  ;;  %v671_v5 = vand.u32 4294901760, %v670_v18  ;;  %v225_v20 = vld [vmem:[#allocation6 + $0x80] sm:$0xff]  ;;  %v693_v4 = vand.u32 4294901760, %v1666_v60  ;;  %v1946_v18 = vand.u32 4294901760, %v1653_v61 }
  0x63   : > { %595 = vmatpush.msrb.mxu2 %v1561_v51  ;;  %666 = vmatpush.msrb.mxu3 %v665_v41  ;;  %v1707_v13 = vand.u32 4294901760, %v225_v20  ;;  %v277_v41 = vand.u32 4294901760, %v1692_v15  ;;  %v1718_v37 = vsub.f32 %v226_v3, %v1694_v2  ;;  %v1949_v3 = vand.u32 4294901760, %v1477_v1 }
  0x64   : > { %509 = vmatpush.msrb.mxu0 %v1943_v29  ;;  %554 = vmatpush.msrb.mxu1 %v1366_v9  ;;  %v677_v9 = vand.u32 4294901760, %v676_v19  ;;  %v688_v14 = vsub.f32 %v1653_v61, %v1946_v18  ;;  %v699_v29 = vand.u32 4294901760, %v1681_v16  ;;  %v694_v19 = vsub.f32 %v1666_v60, %v693_v4 }
  0x65   : > { %597 = vmatpush.msrb.mxu2 %v1576_v28  ;;  %672 = vmatpush.msrb.mxu3 %v671_v5  ;;  %v705_v5 = vand.u32 4294901760, %v1705_v43  ;;  %v711_v18 = vand.u32 4294901760, %v1718_v37 }
  0x66   : > { %513 = vmatpush.msrb.mxu0 %v1945_v40  ;;  %556 = vmatpush.msrb.mxu1 %v1368_v10  ;;  %v683_v10 = vand.u32 4294901760, %v682_v47  ;;  %v1948_v40 = vand.u32 4294901760, %v1465_v58  ;;  %v700_v52 = vsub.f32 %v1681_v16, %v699_v29  ;;  %v1729_v47 = vsub.f32 %v225_v20, %v1707_v13  ;;  %v208_v58 = vld [vmem:[%s1350_s11 + $0x8] sm:$0xff] }
  0x67   : > { %599 = vmatpush.msrb.mxu2 %v1583_v6  ;;  %678 = vmatpush.msrb.mxu3 %v677_v9  ;;  %v278_v9 = vsub.f32 %v1692_v15, %v277_v41 }
  0x68   : > { %517 = vmatpush.msrb.mxu0 %v1947_v46  ;;  %558 = vmatpush.msrb.mxu1 %v1370_v11  ;;  %v689_v11 = vand.u32 4294901760, %v688_v14  ;;  %v1950_v14 = vand.u32 4294901760, %v1482_v7  ;;  %v701_v1 = vand.u32 4294901760, %v700_v52  ;;  %v717_v20 = vand.u32 4294901760, %v1729_v47 }
  0x69   : > { %601 = vmatpush.msrb.mxu2 %v1596_v23  ;;  %684 = vmatpush.msrb.mxu3 %v683_v10  ;;  %v1746_v46 = vand.u32 4294901760, %v208_v58  ;;  %v1951_v10 = vand.u32 4294901760, %v1505_v39  ;;  %v712_v7 = vsub.f32 %v1718_v37, %v711_v18 }
  0x6a   : > { %521 = vmatpush.msrb.mxu0 %v1948_v40  ;;  %560 = vmatpush.msrb.mxu1 %v1383_v17  ;;  %v695_v17 = vand.u32 4294901760, %v694_v19  ;;  %v1952_v19 = vand.u32 4294901760, %v1518_v49 }
  0x6b   : > { %603 = vmatpush.msrb.mxu2 %v1617_v30  ;;  %690 = vmatpush.msrb.mxu3 %v689_v11  ;;  %v1763_v40 = vsub.f32 %v208_v58, %v1746_v46  ;;  %v1953_v11 = vand.u32 4294901760, %v1525_v55  ;;  %v1956_v55 = vld [vmem:[#allocation12_spill] sm:$0xff] }
  0x6c   : > { %525 = vmatpush.msrb.mxu0 %v1949_v3  ;;  %562 = vmatpush.msrb.mxu1 %v1399_v25  ;;  %v706_v25 = vsub.f32 %v1705_v43, %v705_v5 }
  0x6d   : > { %605 = vmatpush.msrb.mxu2 %v1629_v57  ;;  %696 = vmatpush.msrb.mxu3 %v695_v17  ;;  %v618_v52 = vand.u32 4294901760, %v1763_v40 }
  0x6e   : > { %529 = vmatpush.msrb.mxu0 %v1950_v14  ;;  %564 = vmatpush.msrb.mxu1 %v1418_v33  ;;  %v279_v33 = vand.u32 4294901760, %v278_v9  ;;  %v707_v39 = vand.u32 4294901760, %v706_v25 }
  0x6f   : > { %607 = vmatpush.msrb.mxu2 %v1641_v32  ;;  %702 = vmatpush.msrb.mxu3 %v701_v1 }
  0x70   : > { %533 = vmatpush.msrb.mxu0 %v1951_v10  ;;  %566 = vmatpush.msrb.mxu1 %v1421_v34  ;;  %v718_v34 = vsub.f32 %v1729_v47, %v717_v20 }
  0x71   : > { %609 = vmatpush.msrb.mxu2 %v1655_v0  ;;  %280 = vmatmul.f32.vlgmr.msra.gmra.mxu0 %v279_v33 }
  0x72   : > { %537 = vmatpush.msrb.mxu0 %v1952_v19  ;;  %568 = vmatpush.msrb.mxu1 %v1437_v44  ;;  %v713_v44 = vand.u32 4294901760, %v712_v7  ;;  %v719_v49 = vand.u32 4294901760, %v718_v34 }
  0x73   : > { %611 = vmatpush.msrb.mxu2 %v1678_v36  ;;  %708 = vmatpush.msrb.mxu3 %v707_v39 }
  0x74   : > { %541 = vmatpush.msrb.mxu0 %v1953_v11  ;;  %570 = vmatpush.msrb.mxu1 %v1449_v50  ;;  %v1954_v50 = vand.u32 4294901760, %v1511_v42 }
  0x75   : > { %613 = vmatpush.msrb.mxu2 %v1694_v2  ;;  %714 = vmatpush.msrb.mxu3 %v713_v44 }
  0x76   : > { %728 = vmatpush.msra.mxu0 %v1511_v42  ;;  %572 = vmatpush.msrb.mxu1 %v1457_v53  ;;  %v619_v53 = vsub.f32 %v1763_v40, %v618_v52 }
  0x77   : > { %615 = vmatpush.msrb.mxu2 %v1707_v13  ;;  %720 = vmatpush.msrb.mxu3 %v719_v49 }
  0x78   : > { %731 = vmatpush.msra.mxu0 %v1528_v56  ;;  %574 = vmatpush.msrb.mxu1 %v1473_v63  ;;  %v1955_v63 = vand.u32 4294901760, %v1528_v56  ;;  %v620_v42 = vand.u32 4294901760, %v619_v53  ;;  %v1958_v56 = vand.u32 4294901760, %v1559_v48 }
  0x79   : > { %435 = vmatmul.f32.vlgmr.msra.gmra.mxu2 %v1692_v15  ;;  %474 = vmatmul.f32.vlgmr.msra.gmra.mxu3 %v277_v41 }
  0x7a   : > { %734 = vmatpush.msra.mxu0 %v1546_v38  ;;  %822 = vmatpush.msra.mxu2 %v1954_v50 }
  0x7b   : > { %576 = vmatpush.msrb.mxu1 %v1490_v21  ;;  %889 = vmatpush.msra.mxu3 %v1484_v8  ;;  %v1957_v21 = vand.u32 4294901760, %v1546_v38  ;;  %v1959_v38 = vand.u32 4294901760, %v1574_v62 }
  0x7c   : > { %737 = vmatpush.msra.mxu0 %v1559_v48  ;;  %826 = vmatpush.msra.mxu2 %v1955_v63 }
  0x7d   : > { %578 = vmatpush.msrb.mxu1 %v1956_v55  ;;  %891 = vmatpush.msra.mxu3 %v1497_v31 }
  0x7e   : > { %740 = vmatpush.msra.mxu0 %v1574_v62  ;;  %381 = vmatmul.f32.vlgmr.msra.gmra.mxu1 %v1668_v22 }
  0x7f   : > { %830 = vmatpush.msra.mxu2 %v1957_v21  ;;  %781 = vmatpush.msra.mxu1 %v1484_v8  ;;  %v1960_v8 = vand.u32 4294901760, %v1591_v24 }
  0x80   : > { %743 = vmatpush.msra.mxu0 %v1591_v24  ;;  %893 = vmatpush.msra.mxu3 %v1520_v54  ;;  %v1962_v24 = vand.u32 4294901760, %v1610_v35 }
  0x81   : > { %834 = vmatpush.msra.mxu2 %v1958_v56  ;;  %783 = vmatpush.msra.mxu1 %v1497_v31  ;;  %v1961_v31 = vand.u32 4294901760, %v1604_v27 }
  0x82   : > { %621 = vmatmul.f32.vlgmr.msrb.gmra.mxu2 %v620_v42  ;;  %746 = vmatpush.msra.mxu0 %v1604_v27  ;;  %v1964_v27 = vand.u32 4294901760, %v1639_v59 }
  0x83   : > { %785 = vmatpush.msra.mxu1 %v1520_v54  ;;  %838 = vmatpush.msra.mxu2 %v1959_v38 }
  0x84   : > { %895 = vmatpush.msra.mxu3 %v1535_v12  ;;  %543 = vmatmul.f32.vlgmr.msrb.gmra.mxu0 %v1668_v22 }
  0x85   : > { %722 = vmatmul.f32.vlgmr.msrb.gmra.mxu3 %v1746_v46  ;;  %749 = vmatpush.msra.mxu0 %v1610_v35 }
  0x86   : > { %787 = vmatpush.msra.mxu1 %v1535_v12  ;;  %842 = vmatpush.msra.mxu2 %v1960_v8 }
  0x87   : > { %897 = vmatpush.msra.mxu3 %v1548_v26  ;;  %580 = vmatmul.f32.vlgmr.msrb.gmra.mxu1 %v1668_v22 }
  0x88   : > { %752 = vmatpush.msra.mxu0 %v1622_v45  ;;  %789 = vmatpush.msra.mxu1 %v1548_v26  ;;  %v1963_v26 = vand.u32 4294901760, %v1622_v45 }
  0x89   : > { %846 = vmatpush.msra.mxu2 %v1961_v31  ;;  %899 = vmatpush.msra.mxu3 %v1561_v51 }
  0x8a   : > { %755 = vmatpush.msra.mxu0 %v1639_v59  ;;  %791 = vmatpush.msra.mxu1 %v1561_v51 }
  0x8b   : > { %850 = vmatpush.msra.mxu2 %v1962_v24  ;;  %901 = vmatpush.msra.mxu3 %v1576_v28 }
  0x8c   : > { %758 = vmatpush.msra.mxu0 %v1653_v61  ;;  %793 = vmatpush.msra.mxu1 %v1576_v28  ;;  %v1965_v28 = vand.u32 4294901760, %v1653_v61 }
  0x8d   : > { %854 = vmatpush.msra.mxu2 %v1963_v26  ;;  %903 = vmatpush.msra.mxu3 %v1583_v6 }
  0x8e   : > { %761 = vmatpush.msra.mxu0 %v1666_v60  ;;  %795 = vmatpush.msra.mxu1 %v1583_v6 }
  0x8f   : > { %858 = vmatpush.msra.mxu2 %v1964_v27  ;;  %905 = vmatpush.msra.mxu3 %v1596_v23 }
  0x90   : > { %764 = vmatpush.msra.mxu0 %v1681_v16  ;;  %797 = vmatpush.msra.mxu1 %v1596_v23  ;;  %v242_v23 = vstv %s241_s21 }
  0x91   : > { %862 = vmatpush.msra.mxu2 %v1965_v28  ;;  %907 = vmatpush.msra.mxu3 %v1617_v30 }
  0x92   : > { %767 = vmatpush.msra.mxu0 %v1705_v43  ;;  %799 = vmatpush.msra.mxu1 %v1617_v30 }
  0x93   : > { %866 = vmatpush.msra.mxu2 %v693_v4  ;;  %909 = vmatpush.msra.mxu3 %v1629_v57 }
  0x94   : > { %770 = vmatpush.msra.mxu0 %v1718_v37  ;;  %801 = vmatpush.msra.mxu1 %v1629_v57 }
  0x95   : > { %870 = vmatpush.msra.mxu2 %v699_v29  ;;  %911 = vmatpush.msra.mxu3 %v1641_v32 }
  0x96   : > { %773 = vmatpush.msra.mxu0 %v1729_v47  ;;  %803 = vmatpush.msra.mxu1 %v1641_v32 }
  0x97   : > { %874 = vmatpush.msra.mxu2 %v705_v5  ;;  %913 = vmatpush.msra.mxu3 %v1655_v0 }
  0x98   : > { %776 = vmatmul.f32.vlgmr.msra.gmra.mxu0 %v1763_v40  ;;  %805 = vmatpush.msra.mxu1 %v1655_v0 }
  0x99   : > { %878 = vmatpush.msra.mxu2 %v711_v18  ;;  %915 = vmatpush.msra.mxu3 %v1678_v36 }
  0x9a   : > { %807 = vmatpush.msra.mxu1 %v1678_v36 }
  0x9b   : > { %882 = vmatpush.msra.mxu2 %v717_v20  ;;  %917 = vmatpush.msra.mxu3 %v1694_v2 }
  0x9c   : > { %884 = vmatmul.f32.vlgmr.msra.gmra.mxu2 %v1746_v46  ;;  %809 = vmatpush.msra.mxu1 %v1694_v2 }
  0x9d   : > { %919 = vmatpush.msra.mxu3 %v1707_v13 }
  0x9e   : > { %921 = vmatmul.f32.vlgmr.msra.gmra.mxu3 %v1746_v46  ;;  %811 = vmatpush.msra.mxu1 %v1707_v13 }
  0x9f   : > { %815 = vmatmul.f32.vlgmr.msra.gmra.mxu1 %v618_v52 }
  0xee   : > { %v281_v51 = vpop.f32.mrf.mxu0 }
  0xef   : > { %v282_v30 = vadd.f32 %v281_v51, %v242_v23 }
  0xfb   : > { %v382_v54 = vpop.f32.mrf.mxu1 }
  0xfc   : > { %v383_v62 = vadd.f32 %v382_v54, %v282_v30  ;;  %v436_v12 = vpop.f32.mrf.mxu2  ;;  %v475_v48 = vpop.f32.mrf.mxu3 }
  0xfe   : > { %v437_v6 = vadd.f32 %v436_v12, %v383_v62 }
 0x100   : > { %v476_v35 = vadd.f32 %v475_v48, %v437_v6 }
 0x101   : > { %v544_v57 = vpop.f32.mrf.mxu0 }
 0x102   : > { %v545_v45 = vadd.f32 %v544_v57, %v476_v35 }
 0x104   : > { %v581_v32 = vpop.f32.mrf.mxu1 }
 0x105   : > { %v582_v0 = vadd.f32 %v581_v32, %v545_v45  ;;  %v622_v59 = vpop.f32.mrf.mxu2 }
 0x107   : > { %v623_v22 = vadd.f32 %v622_v59, %v582_v0 }
 0x108   : > { %v723_v61 = vpop.f32.mrf.mxu3 }
 0x109   : > { %v724_v60 = vadd.f32 %v723_v61, %v623_v22 }
 0x115   : > { %v777_v16 = vpop.f32.mrf.mxu0 }
 0x116   : > { %v778_v15 = vadd.f32 %v777_v16, %v724_v60 }
 0x11c   : > { %v816_v36 = vpop.f32.mrf.mxu1 }
 0x11d   : > { %v817_v4 = vadd.f32 %v816_v36, %v778_v15 }
 0x11f   : > { %v885_v2 = vpop.f32.mrf.mxu2 }
 0x120   : > { %v886_v29 = vadd.f32 %v885_v2, %v817_v4 }
 0x121   : > { %v922_v43 = vpop.f32.mrf.mxu3 }
 0x122   : > { %v923_v13 = vadd.f32 %v922_v43, %v886_v29 }
 0x124   : > { %925 = vst [vmem:[%s206_s19] sm:$0xff] %v923_v13 }
 0x125   : > { %1184 = shalt.err (!%p1181_p9)
}
 0x126   : > { %1044 = dma.vmem_to_hbm [thread:$0]  (%p1315_p13), %s940_s22, 128, %s942_s23, %s927_s24  }
 0x127 PF: > { %s953_s6 = sand.u32 1, %s1215_s14   ;;  %p1966_p10 = scmp.ge.s32.totalorder %s1227_s17, 2 }
 0x128   : > { %s954_s10 = scalar_lea.sflag [#allocation5], %s953_s6 }
 0x129   : > { %p1055_p11 = pnand %p1966_p10, %p1320_p4 }
 0x12b   : > { %p1056_p0 = pneg %p1055_p11 }
 0x12d   : > { %1210 = dma.done.wait (%p1056_p0), %s954_s10, 128  }
 0x12e   : > { %1212 = vsyncadd (%p1056_p0), %s954_s10, 4294967168  ;;  %p18_p2 = scmp.ge.s32.totalorder %s1295_s27, 4   ;;  %s1967_s14 = smov %s1219_s15 }
 0x12f   : > { %s1968_s15 = smov %s1223_s16  ;;  %s1969_s16 = smov %s1307_s30 }
 0x130   : > { %s1970_s17 = smov %s1295_s27  ;;  %20 = sbr.rel (!%p18_p2) target bundleno = 8 (0x8), region = 81 }
 0x135   :  { %960 = vsyncpa [#allocation4], 1 }
 0x136   :  { %962 = vsyncpa [#allocation4 + $0x1], 1 }
 0x137   :  { %963 = vsyncpa [#allocation7], 1 }
 0x138   :  { %964 = vsyncpa [#allocation5], 1 }
 0x139   :  { %966 = vsyncpa [#allocation5 + $0x1], 1 }

</bundles_post_ra>
